<compile_context>
chip_gen: v5e
topology: v5e:2x2
jax: 0.10.0
libtpu: 0.0.40
codegen_flags: <defaults>
</compile_context>

<pallas_src>
import functools

import jax
import jax.numpy as jnp
from jax.experimental import pallas as pl
from jax.experimental.pallas import tpu as pltpu

BN_EPS = 1e-5
LANE = 128
SUBLANE = 8
NEG_INF = -1e30


def _round_up(x: int, m: int) -> int:
    return ((x + m - 1) // m) * m


def _make_mlp_kernel(n_layers: int):
    """Fused kernel: n_layers x (matmul+bias+ReLU, BN pre-folded) + out matmul + softmax."""

    def kernel(*refs):
        x_ref = refs[0]
        out_ref = refs[-1]
        params = refs[1:-1]  # per layer: (w bf16, b f32), then (w_out bf16, b_out f32)

        h = x_ref[...]  # (TB, F_pad) bf16
        idx = 0
        for _ in range(n_layers):
            w, b = params[idx], params[idx + 1]
            idx += 2
            # MXU matmul with f32 accumulation; bias add + ReLU on VPU in f32.
            z = jnp.dot(h, w[...], preferred_element_type=jnp.float32) + b[...]
            h = jnp.maximum(z, 0.0).astype(jnp.bfloat16)

        w_out, b_out = params[idx], params[idx + 1]
        logits = jnp.dot(h, w_out[...], preferred_element_type=jnp.float32) + b_out[...]

        # Numerically stable softmax over the lane axis. Padded target lanes carry a
        # -1e30 bias => exp underflows to 0, so normalization matches the unpadded case.
        # Exact f32 divide for the normalization (approx reciprocal was too loose).
        m = jnp.max(logits, axis=1, keepdims=True)
        e = jnp.exp(logits - m)
        denom = jnp.sum(e, axis=1, keepdims=True)
        out_ref[...] = (e / denom).astype(out_ref.dtype)

    return kernel


def _fold_and_pad_params(params, n_layers, n_features, n_targets):
    """Fold BN(eval) into Linear, pad all feature axes to multiples of 128, cast W to bf16."""
    f_pad = _round_up(n_features, LANE)
    t_pad = _round_up(n_targets, LANE)

    folded = []
    in_dim, in_pad = n_features, f_pad
    idx = 0
    for _ in range(n_layers):
        w, b, gamma, beta, rmean, rvar = params[idx : idx + 6]
        idx += 6
        hid = w.shape[1]
        hid_pad = _round_up(hid, LANE)
        scale = gamma * jax.lax.rsqrt(rvar + BN_EPS)             # (1, hid)
        w_f = (w * scale).astype(jnp.bfloat16)                   # (in, hid)
        b_f = ((b - rmean) * scale + beta).astype(jnp.float32)   # (1, hid)
        w_p = jnp.zeros((in_pad, hid_pad), jnp.bfloat16).at[:in_dim, :hid].set(w_f)
        b_p = jnp.zeros((1, hid_pad), jnp.float32).at[:, :hid].set(b_f)
        folded += [w_p, b_p]
        in_dim, in_pad = hid, hid_pad

    w_out, b_out = params[idx], params[idx + 1]
    w_p = jnp.zeros((in_pad, t_pad), jnp.bfloat16).at[:in_dim, :n_targets].set(
        w_out.astype(jnp.bfloat16))
    # Padded target lanes get a large negative bias so softmax ignores them.
    b_p = jnp.full((1, t_pad), NEG_INF, jnp.float32).at[:, :n_targets].set(
        b_out.astype(jnp.float32))
    folded += [w_p, b_p]
    return folded, f_pad, t_pad


def mlp_forward(x, params, n_layers: int, n_targets: int):
    """x: (B, *) -> flattened to (B, n_features). params: flat raw (PyTorch-style) list."""
    batch = x.shape[0]
    x2d = x.reshape(batch, -1)  # x.view(x.size(0), -1)
    n_features = x2d.shape[1]

    folded, f_pad, t_pad = _fold_and_pad_params(params, n_layers, n_features, n_targets)

    # Batch tile: sublane-aligned; MXU-friendly 256-row tiles once the batch is large.
    tb = 256 if batch >= 256 else _round_up(batch, SUBLANE)
    b_pad = _round_up(batch, tb)
    grid = (b_pad // tb,)

    x_p = jnp.zeros((b_pad, f_pad), jnp.bfloat16).at[:batch, :n_features].set(
        x2d.astype(jnp.bfloat16))

    in_specs = [pl.BlockSpec((tb, f_pad), lambda i: (i, 0))]
    for p in folded:
        # Full-array blocks with constant index_map -> weights stay resident across the grid.
        in_specs.append(pl.BlockSpec(p.shape, lambda i: (0, 0)))
    out_spec = pl.BlockSpec((tb, t_pad), lambda i: (i, 0))

    # VMEM budget: double-buffered activation/output tiles + resident params + headroom.
    tile_bytes = tb * f_pad * 2 + tb * t_pad * 4
    param_bytes = sum(p.size * p.dtype.itemsize for p in folded)
    vmem_limit = min(max(2 * (tile_bytes + param_bytes) + (4 << 20), 8 << 20), 100 << 20)

    out = pl.pallas_call(
        _make_mlp_kernel(n_layers),
        out_shape=jax.ShapeDtypeStruct((b_pad, t_pad), jnp.float32),
        grid=grid,
        in_specs=in_specs,
        out_specs=out_spec,
        compiler_params=pltpu.CompilerParams(
            dimension_semantics=("parallel",),
            vmem_limit_bytes=vmem_limit,
        ),
    )(x_p, *folded)
    return out[:batch, :n_targets]


def init_params(key, n_features, n_targets, hidden_dim, n_layers):
    """Deterministic synthetic parameters matching the PyTorch module's shapes.

    Linear weights are stored pre-transposed as (in, out)."""
    params = []
    in_dim = n_features
    for _ in range(n_layers):
        key, kw, kb, kg, kbt, krm, krv = jax.random.split(key, 7)
        w = jax.random.normal(kw, (in_dim, hidden_dim), jnp.float32) * 0.1
        b = jax.random.normal(kb, (1, hidden_dim), jnp.float32) * 0.1
        gamma = 1.0 + 0.1 * jax.random.normal(kg, (1, hidden_dim), jnp.float32)
        beta = 0.1 * jax.random.normal(kbt, (1, hidden_dim), jnp.float32)
        rmean = 0.1 * jax.random.normal(krm, (1, hidden_dim), jnp.float32)
        rvar = jax.random.uniform(krv, (1, hidden_dim), jnp.float32, 0.5, 1.5)
        params += [w, b, gamma, beta, rmean, rvar]
        in_dim = hidden_dim

    key, kw, kb = jax.random.split(key, 3)
    w_out = jax.random.normal(kw, (in_dim, n_targets), jnp.float32) * 0.1
    b_out = jax.random.normal(kb, (1, n_targets), jnp.float32) * 0.1
    params += [w_out, b_out]
    return params


def reference_forward(x, params, n_layers):
    """Pure-JAX f32 reference for correctness check."""
    h = x.reshape(x.shape[0], -1).astype(jnp.float32)
    idx = 0
    for _ in range(n_layers):
        w, b, gamma, beta, rmean, rvar = params[idx : idx + 6]
        idx += 6
        h = h @ w + b
        h = (h - rmean) / jnp.sqrt(rvar + BN_EPS) * gamma + beta
        h = jnp.maximum(h, 0.0)
    w_out, b_out = params[idx], params[idx + 1]
    logits = h @ w_out + b_out
    return jax.nn.softmax(logits, axis=1)


if __name__ == "__main__":
    # Small shapes: batch=8, input (8, 2, 4, 4) -> flattened n_features=32.
    batch = 8
    n_features = 2 * 4 * 4
    n_targets = 8
    hidden_dim = 32
    n_layers = 2

    key = jax.random.PRNGKey(0)
    key, kx = jax.random.split(key)
    x = jax.random.normal(kx, (batch, 2, 4, 4), jnp.float32)

    params = init_params(key, n_features, n_targets, hidden_dim, n_layers)

    fwd = jax.jit(functools.partial(mlp_forward, n_layers=n_layers, n_targets=n_targets))
    out = fwd(x, params)
    jax.block_until_ready(out)

    ref = reference_forward(x, params, n_layers)
    assert out.shape == (batch, n_targets)
    # Tolerance loosened vs f32 reference: weights/activations go through bf16 on the MXU.
    assert jnp.allclose(out, ref, atol=2e-2, rtol=0.0), "mismatch vs reference"
    # Softmax rows sum to ~1 (exact f32 divide in the kernel normalization).
    assert jnp.allclose(jnp.sum(out, axis=1), jnp.ones(batch), atol=1e-3)

    print("KERNEL_OK")
</pallas_src>

<mosaic_0001>
module attributes {stable_mosaic.version = 11 : i64} {
  func.func @kernel(%arg0: i32, %arg1: memref<8x128xbf16, #tpu.memory_space<vmem>>, %arg2: memref<128x128xbf16, #tpu.memory_space<vmem>>, %arg3: memref<1x128xf32, #tpu.memory_space<vmem>>, %arg4: memref<128x128xbf16, #tpu.memory_space<vmem>>, %arg5: memref<1x128xf32, #tpu.memory_space<vmem>>, %arg6: memref<128x128xbf16, #tpu.memory_space<vmem>>, %arg7: memref<1x128xf32, #tpu.memory_space<vmem>>, %arg8: memref<8x128xf32, #tpu.memory_space<vmem>>) attributes {dimension_semantics = [#tpu.dimension_semantics<parallel>], iteration_bounds = array<i64: 1>, scalar_prefetch = 0 : i64, scratch_operands = 0 : i64, tpu.core_type = #tpu.core_type<tc>, window_params = [{transform_indices = @transform_0, window_bounds = array<i64: 8, 128>}, {pipeline_mode = #tpu.pipeline_mode<synchronous>, transform_indices = @transform_1, window_bounds = array<i64: 128, 128>}, {pipeline_mode = #tpu.pipeline_mode<synchronous>, transform_indices = @transform_2, window_bounds = array<i64: 1, 128>}, {pipeline_mode = #tpu.pipeline_mode<synchronous>, transform_indices = @transform_3, window_bounds = array<i64: 128, 128>}, {pipeline_mode = #tpu.pipeline_mode<synchronous>, transform_indices = @transform_4, window_bounds = array<i64: 1, 128>}, {pipeline_mode = #tpu.pipeline_mode<synchronous>, transform_indices = @transform_5, window_bounds = array<i64: 128, 128>}, {pipeline_mode = #tpu.pipeline_mode<synchronous>, transform_indices = @transform_6, window_bounds = array<i64: 1, 128>}, {transform_indices = @transform_7, window_bounds = array<i64: 8, 128>}]} {
    %c0 = arith.constant 0 : index
    %c0_0 = arith.constant 0 : index
    %0 = vector.load %arg1[%c0, %c0_0] : memref<8x128xbf16, #tpu.memory_space<vmem>>, vector<8x128xbf16>
    %c0_1 = arith.constant 0 : index
    %c0_2 = arith.constant 0 : index
    %1 = vector.load %arg2[%c0_1, %c0_2] : memref<128x128xbf16, #tpu.memory_space<vmem>>, vector<128x128xbf16>
    %cst = arith.constant dense<0.000000e+00> : vector<8x128xf32>
    %2 = tpu.matmul %0, %1, %cst {dimension_numbers = #tpu.dot_dimension_numbers<[1], [0], [0], [1], [0, 0, 1, 1], [], []>} : vector<8x128xbf16>, vector<128x128xbf16>, vector<8x128xf32> -> vector<8x128xf32>
    %c0_3 = arith.constant 0 : index
    %c0_4 = arith.constant 0 : index
    %3 = vector.load %arg3[%c0_3, %c0_4] : memref<1x128xf32, #tpu.memory_space<vmem>>, vector<1x128xf32>
    %4 = vector.broadcast %3 : vector<1x128xf32> to vector<8x128xf32>
    %5 = arith.addf %2, %4 : vector<8x128xf32>
    %cst_5 = arith.constant 0.000000e+00 : f32
    %6 = vector.broadcast %cst_5 : f32 to vector<8x128xf32>
    %7 = arith.maximumf %5, %6 : vector<8x128xf32>
    %8 = arith.truncf %7 : vector<8x128xf32> to vector<8x128xbf16>
    %c0_6 = arith.constant 0 : index
    %c0_7 = arith.constant 0 : index
    %9 = vector.load %arg4[%c0_6, %c0_7] : memref<128x128xbf16, #tpu.memory_space<vmem>>, vector<128x128xbf16>
    %cst_8 = arith.constant dense<0.000000e+00> : vector<8x128xf32>
    %10 = tpu.matmul %8, %9, %cst_8 {dimension_numbers = #tpu.dot_dimension_numbers<[1], [0], [0], [1], [0, 0, 1, 1], [], []>} : vector<8x128xbf16>, vector<128x128xbf16>, vector<8x128xf32> -> vector<8x128xf32>
    %c0_9 = arith.constant 0 : index
    %c0_10 = arith.constant 0 : index
    %11 = vector.load %arg5[%c0_9, %c0_10] : memref<1x128xf32, #tpu.memory_space<vmem>>, vector<1x128xf32>
    %12 = vector.broadcast %11 : vector<1x128xf32> to vector<8x128xf32>
    %13 = arith.addf %10, %12 : vector<8x128xf32>
    %cst_11 = arith.constant 0.000000e+00 : f32
    %14 = vector.broadcast %cst_11 : f32 to vector<8x128xf32>
    %15 = arith.maximumf %13, %14 : vector<8x128xf32>
    %16 = arith.truncf %15 : vector<8x128xf32> to vector<8x128xbf16>
    %c0_12 = arith.constant 0 : index
    %c0_13 = arith.constant 0 : index
    %17 = vector.load %arg6[%c0_12, %c0_13] : memref<128x128xbf16, #tpu.memory_space<vmem>>, vector<128x128xbf16>
    %cst_14 = arith.constant dense<0.000000e+00> : vector<8x128xf32>
    %18 = tpu.matmul %16, %17, %cst_14 {dimension_numbers = #tpu.dot_dimension_numbers<[1], [0], [0], [1], [0, 0, 1, 1], [], []>} : vector<8x128xbf16>, vector<128x128xbf16>, vector<8x128xf32> -> vector<8x128xf32>
    %c0_15 = arith.constant 0 : index
    %c0_16 = arith.constant 0 : index
    %19 = vector.load %arg7[%c0_15, %c0_16] : memref<1x128xf32, #tpu.memory_space<vmem>>, vector<1x128xf32>
    %20 = vector.broadcast %19 : vector<1x128xf32> to vector<8x128xf32>
    %21 = arith.addf %18, %20 : vector<8x128xf32>
    %cst_17 = arith.constant dense<0xFF800000> : vector<8xf32>
    %22 = vector.multi_reduction <maximumf>, %21, %cst_17 [1] : vector<8x128xf32> to vector<8xf32>
    %23 = vector.shape_cast %22 : vector<8xf32> to vector<8x1xf32>
    %24 = vector.broadcast %23 : vector<8x1xf32> to vector<8x128xf32>
    %25 = arith.subf %21, %24 : vector<8x128xf32>
    %26 = math.exp %25 : vector<8x128xf32>
    %cst_18 = arith.constant dense<0.000000e+00> : vector<8xf32>
    %27 = vector.multi_reduction <add>, %26, %cst_18 [1] : vector<8x128xf32> to vector<8xf32>
    %28 = vector.shape_cast %27 : vector<8xf32> to vector<8x1xf32>
    %29 = vector.broadcast %28 : vector<8x1xf32> to vector<8x128xf32>
    %30 = arith.divf %26, %29 : vector<8x128xf32>
    %c0_19 = arith.constant 0 : index
    %c0_20 = arith.constant 0 : index
    %31 = vector.load %arg8[%c0_19, %c0_20] : memref<8x128xf32, #tpu.memory_space<vmem>>, vector<8x128xf32>
    tpu.vector_store %arg8[%c0_19, %c0_20], %30 {strides = array<i32>} : memref<8x128xf32, #tpu.memory_space<vmem>>, vector<8x128xf32>,
    return
  }
  func.func @transform_0(%arg0: i32) -> (i32, i32) {
    %c0_i32 = arith.constant 0 : i32
    %c0_i32_0 = arith.constant 0 : i32
    return %arg0, %c0_i32 : i32, i32
  }
  func.func @transform_1(%arg0: i32) -> (i32, i32) {
    %c0_i32 = arith.constant 0 : i32
    %c0_i32_0 = arith.constant 0 : i32
    %c0_i32_1 = arith.constant 0 : i32
    return %c0_i32, %c0_i32_0 : i32, i32
  }
  func.func @transform_2(%arg0: i32) -> (i32, i32) {
    %c0_i32 = arith.constant 0 : i32
    %c0_i32_0 = arith.constant 0 : i32
    %c0_i32_1 = arith.constant 0 : i32
    return %c0_i32, %c0_i32_0 : i32, i32
  }
  func.func @transform_3(%arg0: i32) -> (i32, i32) {
    %c0_i32 = arith.constant 0 : i32
    %c0_i32_0 = arith.constant 0 : i32
    %c0_i32_1 = arith.constant 0 : i32
    return %c0_i32, %c0_i32_0 : i32, i32
  }
  func.func @transform_4(%arg0: i32) -> (i32, i32) {
    %c0_i32 = arith.constant 0 : i32
    %c0_i32_0 = arith.constant 0 : i32
    %c0_i32_1 = arith.constant 0 : i32
    return %c0_i32, %c0_i32_0 : i32, i32
  }
  func.func @transform_5(%arg0: i32) -> (i32, i32) {
    %c0_i32 = arith.constant 0 : i32
    %c0_i32_0 = arith.constant 0 : i32
    %c0_i32_1 = arith.constant 0 : i32
    return %c0_i32, %c0_i32_0 : i32, i32
  }
  func.func @transform_6(%arg0: i32) -> (i32, i32) {
    %c0_i32 = arith.constant 0 : i32
    %c0_i32_0 = arith.constant 0 : i32
    %c0_i32_1 = arith.constant 0 : i32
    return %c0_i32, %c0_i32_0 : i32, i32
  }
  func.func @transform_7(%arg0: i32) -> (i32, i32) {
    %c0_i32 = arith.constant 0 : i32
    %c0_i32_0 = arith.constant 0 : i32
    return %arg0, %c0_i32 : i32, i32
  }
}

</mosaic_0001>

<bundles_post_ra>
// kernel: mlp_forward.1
= control target key start
LH: loop header
LB: loop body
LE: loop exit
PB: predicated region body
PF: predicated region fallthrough
CT: control target
= control target key end

     0   :  { %s596_s0 = inlined_call_operand.vmem [shape: bf16[8,128], index: 0, kind: input, shape index: {}]   ;;  %s597_s1 = inlined_call_operand.vmem [shape: bf16[128,128], index: 1, kind: input, shape index: {}]   ;;  %s598_s2 = inlined_call_operand.vmem [shape: f32[1,128], index: 2, kind: input, shape index: {}]   ;;  %s599_s3 = inlined_call_operand.vmem [shape: bf16[128,128], index: 3, kind: input, shape index: {}]   ;;  %s600_s4 = inlined_call_operand.vmem [shape: f32[1,128], index: 4, kind: input, shape index: {}]   ;;  %s601_s5 = inlined_call_operand.vmem [shape: bf16[128,128], index: 5, kind: input, shape index: {}]   ;;  %s602_s6 = inlined_call_operand.vmem [shape: f32[1,128], index: 6, kind: input, shape index: {}]   ;;  %s603_s7 = inlined_call_operand.hbm [shape: f32[8,128], index: 7, kind: output, shape index: {}]  }
   0x1   :  { %v417_v0 = vld [vmem:[%s597_s1 + $0x38] sm:$0xff]  ;;  %v416_v1 = vld [vmem:[%s597_s1 + $0x30] sm:$0xff]  ;;  %v415_v4 = vld [vmem:[%s597_s1 + $0x28] sm:$0xff] }
   0x2   :  { %96 = vmatpush.bf16.msra.mxu0 %v417_v0  ;;  %v425_v2 = vld [vmem:[%s599_s3 + $0x38] sm:$0xff]  ;;  %v424_v3 = vld [vmem:[%s599_s3 + $0x30] sm:$0xff] }
   0x3   :  { %179 = vmatpush.bf16.msra.mxu1 %v425_v2 }
   0x6   :  { %97 = vmatpush.bf16.msra.mxu0 %v416_v1 }
   0x7   :  { %12 = vsyncpa [#allocation3], 0  ;;  %180 = vmatpush.bf16.msra.mxu1 %v424_v3  ;;  %v423_v5 = vld [vmem:[%s599_s3 + $0x28] sm:$0xff]  ;;  %v414_v6 = vld [vmem:[%s597_s1 + $0x20] sm:$0xff]  ;;  %s305_s8 = sshll.u32 %s603_s7, 4  ;;  %s306_s8 = int_to_ptr.hbm [resolvable:$true] %s305_s8 }
   0x8   :  { %v422_v7 = vld [vmem:[%s599_s3 + $0x20] sm:$0xff]  ;;  %v413_v8 = vld [vmem:[%s597_s1 + $0x18] sm:$0xff]  ;;  %v412_v10 = vld [vmem:[%s597_s1 + $0x10] sm:$0xff] }
   0x9   :  { %v421_v9 = vld [vmem:[%s599_s3 + $0x18] sm:$0xff]  ;;  %v420_v11 = vld [vmem:[%s599_s3 + $0x10] sm:$0xff]  ;;  %v411_v12 = vld [vmem:[%s597_s1 + $0x8] sm:$0xff] }
   0xa   :  { %98 = vmatpush.bf16.msra.mxu0 %v415_v4  ;;  %v410_v13 = vld [vmem:[%s597_s1] sm:$0xff]  ;;  %v419_v15 = vld [vmem:[%s599_s3 + $0x8] sm:$0xff]  ;;  %v433_v17 = vld [vmem:[%s601_s5 + $0x38] sm:$0xff] }
   0xb   :  { %181 = vmatpush.bf16.msra.mxu1 %v423_v5  ;;  %v27_v14 = vld [vmem:[%s596_s0] sm:$0xf]  ;;  %262 = vmatpush.bf16.msra.mxu2 %v433_v17  ;;  %v432_v18 = vld [vmem:[%s601_s5 + $0x30] sm:$0xff]  ;;  %v431_v19 = vld [vmem:[%s601_s5 + $0x28] sm:$0xff] }
   0xc   :  { %v418_v16 = vld [vmem:[%s599_s3] sm:$0xff]  ;;  %v429_v21 = vld [vmem:[%s601_s5 + $0x18] sm:$0xff]  ;;  %v428_v22 = vld [vmem:[%s601_s5 + $0x10] sm:$0xff] }
   0xd   :  { %v430_v20 = vld [vmem:[%s601_s5 + $0x20] sm:$0xff]  ;;  %v427_v29 = vld [vmem:[%s601_s5 + $0x8] sm:$0xff] }
   0xe   :  { %99 = vmatpush.bf16.msra.mxu0 %v414_v6  ;;  %v435_v23 = vld [vmem:[%s598_s2] ss:$0 sm:$0xff] }
   0xf   :  { %182 = vmatpush.bf16.msra.mxu1 %v422_v7  ;;  %263 = vmatpush.bf16.msra.mxu2 %v432_v18  ;;  %v426_v30 = vld [vmem:[%s601_s5] sm:$0xff] }
  0x10   :  { %v436_v31 = vld [vmem:[%s600_s4] ss:$0 sm:$0xff]  ;;  %s468_s4 = smov [#allocation2]  }
  0x11   :  { %v437_v37 = vld [vmem:[%s602_s6] ss:$0 sm:$0xff]  ;;  %s303_s5 = sshll.u32 %s468_s4, 4  ;;  %s304_s5 = int_to_ptr.vmem [resolvable:$true] %s303_s5 }
  0x12   :  { %100 = vmatpush.bf16.msra.mxu0 %v413_v8 }
  0x13   :  { %183 = vmatpush.bf16.msra.mxu1 %v421_v9  ;;  %264 = vmatpush.bf16.msra.mxu2 %v431_v19 }
  0x16   :  { %101 = vmatpush.bf16.msra.mxu0 %v412_v10 }
  0x17   :  { %184 = vmatpush.bf16.msra.mxu1 %v420_v11  ;;  %265 = vmatpush.bf16.msra.mxu2 %v430_v20 }
  0x1a   :  { %102 = vmatpush.bf16.msra.mxu0 %v411_v12 }
  0x1b   :  { %185 = vmatpush.bf16.msra.mxu1 %v419_v15  ;;  %266 = vmatpush.bf16.msra.mxu2 %v429_v21 }
  0x1e   :  { %103 = vmatpush.bf16.msra.mxu0 %v410_v13 }
  0x1f   :  { %186 = vmatpush.bf16.msra.mxu1 %v418_v16  ;;  %267 = vmatpush.bf16.msra.mxu2 %v428_v22 }
  0x21   :  { %104 = vmatmul.bf16.vlgmr.msra.gmra.mxu0 %v27_v14 }
  0x23   :  { %268 = vmatpush.bf16.msra.mxu2 %v427_v29 }
  0x27   :  { %269 = vmatpush.bf16.msra.mxu2 %v426_v30 }
  0x9e   :  { %v105_v24 = vpop.f32.mrf.mxu0 }
  0x9f   :  { %v106_v25 = vadd.f32 %v435_v23, %v105_v24 }
  0xa1   :  { %v109_v26 = vmax.f32 %v106_v25, 0.0 }
  0xa3   :  { %v110_v27 = vpack.c.bf16 %v109_v26, %v109_v26 }
  0xa5   :  { %187 = vmatmul.bf16.vlgmr.msra.gmra.mxu1 %v110_v27 }
  0xa6   :  { %v107_v28 = vpop.f32.mrf.mxu0 }
 0x122   :  { %v188_v32 = vpop.f32.mrf.mxu1 }
 0x123   :  { %v189_v33 = vadd.f32 %v436_v31, %v188_v32 }
 0x125   :  { %v192_v34 = vmax.f32 %v189_v33, 0.0 }
 0x127   :  { %v193_v35 = vpack.c.bf16 %v192_v34, %v192_v34 }
 0x129   :  { %270 = vmatmul.bf16.vlgmr.msra.gmra.mxu2 %v193_v35 }
 0x12a   :  { %v190_v36 = vpop.f32.mrf.mxu1 }
 0x1ac   :  { %v271_v38 = vpop.f32.mrf.mxu2 }
 0x1ad   :  { %v272_v39 = vadd.f32 %v437_v37, %v271_v38 }
 0x1af   :  { %275 = vmax.xlane.f32.xlu0 %v272_v39 }
 0x1b4   :  { %v273_v40 = vpop.f32.mrf.mxu2 }
 0x222   :  { %v276_v41 = vpop.xlane.xlu0 %275 }
 0x223   :  { %v277_v42 = vsub.f32 %v272_v39, %v276_v41 }
 0x225   :  { %v278_v43 = vmul.f32 1.442695, %v277_v42 }
 0x227   :  { %438 = vpow2.f32 %v278_v43 }
 0x22d   :  { %v439_v44 = vpop.eup %438 }
 0x22e   :  { %280 = vadd.xlane.f32.xlu0 %v439_v44 }
 0x2a1   :  { %v281_v45 = vpop.xlane.xlu0 %280 }
 0x2a2   :  { %440 = vrcp.f32 %v281_v45  ;;  %v293_v49 = vand.u32 2147483648, %v281_v45  ;;  %v291_v51 = vand.u32 2147483647, %v281_v45  ;;  %vm287_vm1 = vweird.f32 %v281_v45 }
 0x2a4   :  { %v294_v53 = vor.u32 1.1754944e-38, %v293_v49  ;;  %vm292_vm3 = vcmp.eq.f32.partialorder %v291_v51, 8.507059e+37 }
 0x2a8   :  { %v441_v46 = vpop.eup %440 }
 0x2a9   :  { %v283_v47 = vmul.f32 %v441_v46, %v281_v45  ;;  %vm288_vm0 = vweird.f32 %v441_v46 }
 0x2aa   :  { %vm289_vm2 = vmor %vm287_vm1, %vm288_vm0 }
 0x2ab   :  { %v284_v48 = vsub.f32 1.0, %v283_v47 }
 0x2ad   :  { %v285_v50 = vmul.f32 %v441_v46, %v284_v48 }
 0x2af   :  { %v286_v52 = vadd.f32 %v441_v46, %v285_v50 }
 0x2b1   :  { %v290_v54 = vsel %vm289_vm2, %v441_v46, %v286_v52 }
 0x2b2   :  { %v295_v55 = vsel %vm292_vm3, %v294_v53, %v290_v54 }
 0x2b3   :  { %v296_v56 = vmul.f32 %v439_v44, %v295_v55 }
 0x2b5   :  { %297 = vst [vmem:[#allocation2] sm:$0xff] %v296_v56 }
 0x2b6   :  { %308 = dma.vmem_to_hbm [thread:$0]  %s304_s5, 128, %s306_s8, [#allocation3]  }
 0x2b7   :  { %466 = dma.done.wait [#allocation3], 128  }
 0x2b8   :  { %467 = vsyncadd [#allocation3], 4294967168 }
 0x2b9   :  { %313 = vsyncpa [#allocation3], 1 }

</bundles_post_ra>
